<compile_context>
chip_gen: v7x
topology: tpu7x:2x2x1
jax: 0.10.0
libtpu: 0.0.40
codegen_flags: <defaults>
</compile_context>

<pallas_src>
import jax
import jax.numpy as jnp
from jax.experimental import pallas as pl
from jax.experimental.pallas import tpu as pltpu

_SQRT_2_OVER_PI = 0.7978845608028654


def _gelu_tanh_f32(h):
    c = jnp.float32(_SQRT_2_OVER_PI)
    return 0.5 * h * (1.0 + jnp.tanh(c * (h + 0.044715 * h * h * h)))


def ffn_kernel_acc(x_ref, w1_ref, b1_ref, w2_ref, b2_ref, o_ref, acc_ref):
    """Variant with an f32 VMEM accumulator (used when output dtype != f32)."""
    h_idx = pl.program_id(1)

    @pl.when(h_idx == 0)
    def _():
        acc_ref[...] = jnp.zeros_like(acc_ref)

    # First linear for this hidden slab: MXU in storage dtype, f32 accumulation.
    h = jnp.dot(x_ref[...], w1_ref[...], preferred_element_type=jnp.float32)
    h = h + b1_ref[...].astype(jnp.float32)
    g = _gelu_tanh_f32(h)
    # Dropout: identity in eval mode.
    # TODO(synk): training-mode dropout (pltpu.prng_seed/prng_random_bits mask) not implemented.
    acc_ref[...] += jnp.dot(g.astype(w2_ref.dtype), w2_ref[...],
                            preferred_element_type=jnp.float32)

    @pl.when(h_idx == pl.num_programs(1) - 1)
    def _():
        o_ref[...] = (acc_ref[...] + b2_ref[...].astype(jnp.float32)).astype(o_ref.dtype)


def ffn_kernel_f32out(x_ref, w1_ref, b1_ref, w2_ref, b2_ref, o_ref):
    """f32-output variant: accumulate directly into the resident output tile (no scratch)."""
    h_idx = pl.program_id(1)

    @pl.when(h_idx == 0)
    def _():
        o_ref[...] = jnp.zeros_like(o_ref)

    h = jnp.dot(x_ref[...], w1_ref[...], preferred_element_type=jnp.float32)
    h = h + b1_ref[...].astype(jnp.float32)
    g = _gelu_tanh_f32(h)
    # Dropout: identity in eval mode.
    o_ref[...] += jnp.dot(g.astype(w2_ref.dtype), w2_ref[...],
                          preferred_element_type=jnp.float32)

    @pl.when(h_idx == pl.num_programs(1) - 1)
    def _():
        o_ref[...] += b2_ref[...].astype(jnp.float32)


def _round_up(a, b):
    return ((a + b - 1) // b) * b


def _round_down(a, b):
    return (a // b) * b


def _tpu_generation():
    try:
        kind = jax.devices()[0].device_kind.lower()
    except Exception:
        return None
    if "v5 lite" in kind or "v5e" in kind or "v5litepod" in kind:
        return "v5e"
    if "v6" in kind:
        return "v6e"
    if "v7" in kind:
        return "v7x"
    return None


# Per-generation presets: row tile, hidden tile, row-tile granularity,
# VMEM budget used for tile shrinking, and ceiling for vmem_limit_bytes.
_PRESETS = {
    "v5e": dict(tm=256, th=256, row_min=128, cap=96 << 20, limit_max=110 << 20),
    "v6e": dict(tm=512, th=512, row_min=256, cap=100 << 20, limit_max=110 << 20),
    "v7x": dict(tm=512, th=256, row_min=256, cap=48 << 20, limit_max=56 << 20),
    None: dict(tm=256, th=512, row_min=128, cap=48 << 20, limit_max=64 << 20),
}


def feed_forward(x, w1, b1, w2, b2, *, compute_dtype=None, tm=None, th=None):
    """x: (B, T, E) -> (B, T, E). w1: (E, 4E), b1: (1|.., 4E), w2: (4E, E), b2: (1|.., E).

    compute_dtype: optionally cast x/W1/W2 (e.g. to jnp.bfloat16) before the MXU;
    output stays in x's original dtype.
    """
    B, T, E = x.shape
    H = w1.shape[-1]
    M = B * T

    b1 = b1.reshape(1, H)
    b2 = b2.reshape(1, E)

    out_dtype = x.dtype
    if compute_dtype is not None:
        x = x.astype(compute_dtype)
        w1 = w1.astype(compute_dtype)
        w2 = w2.astype(compute_dtype)

    x2d = x.reshape(M, E)

    gen = _tpu_generation()
    p = _PRESETS.get(gen, _PRESETS[None])
    tm_req = tm if tm is not None else p["tm"]
    th_req = th if th is not None else p["th"]

    # Row tiles must respect the dtype sublane pack (16 for bf16, 32 for int8/fp8).
    pack = max(8, 32 // x2d.dtype.itemsize)
    row_min = max(p["row_min"], pack)

    tm_req = max(row_min, _round_down(tm_req, row_min))
    th_req = max(128, _round_down(th_req, 128))

    tm_eff = min(tm_req, _round_up(M, row_min))
    th_eff = min(th_req, _round_up(H, 128))

    # v7x has 2 TensorCores: make sure the "parallel" row axis has >= 2 tiles when possible.
    if gen == "v7x" and _round_up(M, tm_eff) // tm_eff < 2 and M > row_min:
        tm_eff = max(row_min, _round_down(_round_up(M, 2 * row_min) // 2, row_min))

    use_acc_scratch = (out_dtype != jnp.float32)

    def footprint(tm_e, th_e):
        in_b = x2d.dtype.itemsize
        w_b = w1.dtype.itemsize
        out_b = out_dtype.itemsize
        f = (2 * tm_e * E * in_b          # x tile (double buffered)
             + 2 * E * th_e * w_b         # W1 slab
             + 2 * th_e * E * w_b         # W2 slab
             + 2 * th_e * 4 + 2 * E * 4   # biases (generous)
             + 2 * tm_e * E * out_b)      # output tile
        if use_acc_scratch:
            f += tm_e * E * 4             # f32 accumulator scratch
        return f

    # Shrink tiles until the footprint fits the per-generation VMEM budget.
    while footprint(tm_eff, th_eff) > p["cap"]:
        if th_eff > 128:
            th_eff = max(128, _round_down(th_eff // 2, 128))
        elif tm_eff > row_min:
            tm_eff = max(row_min, _round_down(tm_eff // 2, row_min))
        else:
            break

    M_pad = _round_up(M, tm_eff)
    H_pad = _round_up(H, th_eff)

    if M_pad != M:
        x2d = jnp.pad(x2d, ((0, M_pad - M), (0, 0)))
    if H_pad != H:
        # Zero-padded hidden columns/rows contribute exactly zero to the output.
        w1 = jnp.pad(w1, ((0, 0), (0, H_pad - H)))
        b1 = jnp.pad(b1, ((0, 0), (0, H_pad - H)))
        w2 = jnp.pad(w2, ((0, H_pad - H), (0, 0)))

    grid = (M_pad // tm_eff, H_pad // th_eff)
    n_row_tiles = grid[0]

    def nbytes(a):
        return a.size * a.dtype.itemsize

    cost = pl.CostEstimate(
        flops=4 * M_pad * E * H_pad,      # two matmuls: 2*M*E*H each
        transcendentals=M_pad * H_pad,    # one tanh per hidden element
        bytes_accessed=(nbytes(x2d)
                        # weights (and biases) are re-streamed once per row tile
                        + n_row_tiles * (nbytes(w1) + nbytes(b1) + nbytes(w2) + nbytes(b2))
                        + M_pad * E * out_dtype.itemsize),
    )

    vmem_limit = int(min(p["limit_max"],
                         max(32 << 20, footprint(tm_eff, th_eff) + (8 << 20))))

    in_specs = [
        pl.BlockSpec((tm_eff, E), lambda i, h: (i, 0)),    # x rows tile
        pl.BlockSpec((E, th_eff), lambda i, h: (0, h)),    # W1 hidden slab
        pl.BlockSpec((1, th_eff), lambda i, h: (0, h)),    # b1 hidden slab
        pl.BlockSpec((th_eff, E), lambda i, h: (h, 0)),    # W2 hidden slab
        pl.BlockSpec((1, E), lambda i, h: (0, 0)),         # b2
    ]
    out_spec = pl.BlockSpec((tm_eff, E), lambda i, h: (i, 0))

    if use_acc_scratch:
        kernel = ffn_kernel_acc
        scratch = [pltpu.VMEM((tm_eff, E), jnp.float32)]
    else:
        kernel = ffn_kernel_f32out
        scratch = []

    out2d = pl.pallas_call(
        kernel,
        out_shape=jax.ShapeDtypeStruct((M_pad, E), out_dtype),
        grid_spec=pltpu.PrefetchScalarGridSpec(
            num_scalar_prefetch=0,
            grid=grid,
            in_specs=in_specs,
            out_specs=out_spec,
            scratch_shapes=scratch,
        ),
        compiler_params=pltpu.CompilerParams(
            dimension_semantics=("parallel", "arbitrary"),
            vmem_limit_bytes=vmem_limit),
        cost_estimate=cost,
    )(x2d, w1, b1, w2, b2)

    return out2d[:M].reshape(B, T, E)


def _reference(x2d, w1, b1, w2, b2):
    h = (x2d.astype(jnp.float32) @ w1.astype(jnp.float32)
         + b1.astype(jnp.float32).reshape(1, -1))
    c = jnp.sqrt(jnp.float32(2.0 / jnp.pi))
    g = 0.5 * h * (1.0 + jnp.tanh(c * (h + 0.044715 * h ** 3)))
    o = g @ w2.astype(jnp.float32) + b2.astype(jnp.float32).reshape(1, -1)
    return o


if __name__ == "__main__":
    # cfg = {'emb_dim': 32, 'drop_rate': 0.1}  (dropout is identity in eval mode)
    B, T, E = 2, 8, 32
    H = 4 * E

    key = jax.random.PRNGKey(0)
    kx, k1, k2, k3, k4 = jax.random.split(key, 5)

    x = jax.random.normal(kx, (B, T, E), dtype=jnp.float32)
    # Deterministic init, scaled roughly like nn.Linear's uniform init.
    w1 = jax.random.uniform(k1, (E, H), minval=-1.0, maxval=1.0, dtype=jnp.float32) / jnp.sqrt(E)
    b1 = jax.random.uniform(k2, (1, H), minval=-1.0, maxval=1.0, dtype=jnp.float32) / jnp.sqrt(E)
    w2 = jax.random.uniform(k3, (H, E), minval=-1.0, maxval=1.0, dtype=jnp.float32) / jnp.sqrt(H)
    b2 = jax.random.uniform(k4, (1, E), minval=-1.0, maxval=1.0, dtype=jnp.float32) / jnp.sqrt(H)

    # 1) f32 path (accumulates directly into the resident output tile, no scratch).
    out = jax.block_until_ready(feed_forward(x, w1, b1, w2, b2))
    ref = _reference(x.reshape(B * T, E), w1, b1, w2, b2).reshape(B, T, E)
    assert out.shape == (B, T, E)
    assert jnp.allclose(out, ref, atol=2e-5, rtol=2e-5), "f32 mismatch vs reference"

    # 2) Non-tile-divisible row count (row-padding path).
    B2, T2 = 2, 7
    x_odd = jax.random.normal(kx, (B2, T2, E), dtype=jnp.float32)
    out_odd = jax.block_until_ready(feed_forward(x_odd, w1, b1, w2, b2))
    ref_odd = _reference(x_odd.reshape(B2 * T2, E), w1, b1, w2, b2).reshape(B2, T2, E)
    assert out_odd.shape == (B2, T2, E)
    assert jnp.allclose(out_odd, ref_odd, atol=2e-5, rtol=2e-5), "padded-row mismatch vs reference"

    # 3) bf16 storage path (f32-scratch accumulator variant, MXU fed in bf16).
    x_bf = x.astype(jnp.bfloat16)
    w1_bf = w1.astype(jnp.bfloat16)
    w2_bf = w2.astype(jnp.bfloat16)
    out_bf = jax.block_until_ready(feed_forward(x_bf, w1_bf, b1, w2_bf, b2))
    ref_bf = _reference(x_bf.reshape(B * T, E), w1_bf, b1, w2_bf, b2).reshape(B, T, E)
    assert out_bf.dtype == jnp.bfloat16
    assert jnp.allclose(out_bf.astype(jnp.float32), ref_bf, atol=1e-1, rtol=1e-1), "bf16 mismatch"

    print("KERNEL_OK")
</pallas_src>

<mosaic_0001>
module attributes {stable_mosaic.version = 11 : i64} {
  func.func @ffn_kernel_f32out(%arg0: i32, %arg1: i32, %arg2: memref<128x32xf32, #tpu.memory_space<vmem>>, %arg3: memref<32x128xf32, #tpu.memory_space<vmem>>, %arg4: memref<1x128xf32, #tpu.memory_space<vmem>>, %arg5: memref<128x32xf32, #tpu.memory_space<vmem>>, %arg6: memref<1x32xf32, #tpu.memory_space<vmem>>, %arg7: memref<128x32xf32, #tpu.memory_space<vmem>>) attributes {dimension_semantics = [#tpu.dimension_semantics<parallel>, #tpu.dimension_semantics<arbitrary>], iteration_bounds = array<i64: 1, 1>, scalar_prefetch = 0 : i64, scratch_operands = 0 : i64, tpu.core_type = #tpu.core_type<tc>, window_params = [{transform_indices = @transform_0, window_bounds = array<i64: 128, 32>}, {transform_indices = @transform_1, window_bounds = array<i64: 32, 128>}, {transform_indices = @transform_2, window_bounds = array<i64: 1, 128>}, {transform_indices = @transform_3, window_bounds = array<i64: 128, 32>}, {pipeline_mode = #tpu.pipeline_mode<synchronous>, transform_indices = @transform_4, window_bounds = array<i64: 1, 32>}, {transform_indices = @transform_5, window_bounds = array<i64: 128, 32>}]} {
    %c0_i32 = arith.constant 0 : i32
    %0 = arith.cmpi eq, %arg1, %c0_i32 : i32
    %1 = arith.extui %0 : i1 to i32
    %c0_i32_0 = arith.constant 0 : i32
    %2 = arith.cmpi ne, %1, %c0_i32_0 : i32
    scf.if %2 {
      %cst_19 = arith.constant 0.000000e+00 : f32
      %30 = vector.broadcast %cst_19 : f32 to vector<128x32xf32>
      %c0_20 = arith.constant 0 : index
      %c0_21 = arith.constant 0 : index
      %31 = vector.load %arg7[%c0_20, %c0_21] : memref<128x32xf32, #tpu.memory_space<vmem>>, vector<128x32xf32>
      tpu.vector_store %arg7[%c0_20, %c0_21], %30 {strides = array<i32>} : memref<128x32xf32, #tpu.memory_space<vmem>>, vector<128x32xf32>,
    } else {
    }
    %c0 = arith.constant 0 : index
    %c0_1 = arith.constant 0 : index
    %3 = vector.load %arg2[%c0, %c0_1] : memref<128x32xf32, #tpu.memory_space<vmem>>, vector<128x32xf32>
    %c0_2 = arith.constant 0 : index
    %c0_3 = arith.constant 0 : index
    %4 = vector.load %arg3[%c0_2, %c0_3] : memref<32x128xf32, #tpu.memory_space<vmem>>, vector<32x128xf32>
    %cst = arith.constant dense<0.000000e+00> : vector<128x128xf32>
    %5 = tpu.matmul %3, %4, %cst {dimension_numbers = #tpu.dot_dimension_numbers<[1], [0], [0], [1], [0, 0, 1, 1], [], []>} : vector<128x32xf32>, vector<32x128xf32>, vector<128x128xf32> -> vector<128x128xf32>
    %c0_4 = arith.constant 0 : index
    %c0_5 = arith.constant 0 : index
    %6 = vector.load %arg4[%c0_4, %c0_5] : memref<1x128xf32, #tpu.memory_space<vmem>>, vector<1x128xf32>
    %7 = vector.broadcast %6 : vector<1x128xf32> to vector<128x128xf32>
    %8 = arith.addf %5, %7 : vector<128x128xf32>
    %cst_6 = arith.constant 5.000000e-01 : f32
    %9 = vector.broadcast %cst_6 : f32 to vector<128x128xf32>
    %10 = arith.mulf %9, %8 : vector<128x128xf32>
    %cst_7 = arith.constant 4.471500e-02 : f32
    %11 = vector.broadcast %cst_7 : f32 to vector<128x128xf32>
    %12 = arith.mulf %11, %8 : vector<128x128xf32>
    %13 = arith.mulf %12, %8 : vector<128x128xf32>
    %14 = arith.mulf %13, %8 : vector<128x128xf32>
    %15 = arith.addf %8, %14 : vector<128x128xf32>
    %cst_8 = arith.constant 0.797884583 : f32
    %16 = vector.broadcast %cst_8 : f32 to vector<128x128xf32>
    %17 = arith.mulf %16, %15 : vector<128x128xf32>
    %18 = math.tanh %17 : vector<128x128xf32>
    %cst_9 = arith.constant 1.000000e+00 : f32
    %19 = vector.broadcast %cst_9 : f32 to vector<128x128xf32>
    %20 = arith.addf %19, %18 : vector<128x128xf32>
    %21 = arith.mulf %10, %20 : vector<128x128xf32>
    %c0_10 = arith.constant 0 : index
    %c0_11 = arith.constant 0 : index
    %22 = vector.load %arg7[%c0_10, %c0_11] : memref<128x32xf32, #tpu.memory_space<vmem>>, vector<128x32xf32>
    %c0_12 = arith.constant 0 : index
    %c0_13 = arith.constant 0 : index
    %23 = vector.load %arg5[%c0_12, %c0_13] : memref<128x32xf32, #tpu.memory_space<vmem>>, vector<128x32xf32>
    %cst_14 = arith.constant dense<0.000000e+00> : vector<128x32xf32>
    %24 = tpu.matmul %21, %23, %cst_14 {dimension_numbers = #tpu.dot_dimension_numbers<[1], [0], [0], [1], [0, 0, 1, 1], [], []>} : vector<128x128xf32>, vector<128x32xf32>, vector<128x32xf32> -> vector<128x32xf32>
    %25 = arith.addf %22, %24 : vector<128x32xf32>
    %c0_15 = arith.constant 0 : index
    %c0_16 = arith.constant 0 : index
    %26 = vector.load %arg7[%c0_15, %c0_16] : memref<128x32xf32, #tpu.memory_space<vmem>>, vector<128x32xf32>
    tpu.vector_store %arg7[%c0_15, %c0_16], %25 {strides = array<i32>} : memref<128x32xf32, #tpu.memory_space<vmem>>, vector<128x32xf32>,
    %c0_i32_17 = arith.constant 0 : i32
    %27 = arith.cmpi eq, %arg1, %c0_i32_17 : i32
    %28 = arith.extui %27 : i1 to i32
    %c0_i32_18 = arith.constant 0 : i32
    %29 = arith.cmpi ne, %28, %c0_i32_18 : i32
    scf.if %29 {
      %c0_19 = arith.constant 0 : index
      %c0_20 = arith.constant 0 : index
      %30 = vector.load %arg7[%c0_19, %c0_20] : memref<128x32xf32, #tpu.memory_space<vmem>>, vector<128x32xf32>
      %c0_21 = arith.constant 0 : index
      %c0_22 = arith.constant 0 : index
      %31 = vector.load %arg6[%c0_21, %c0_22] : memref<1x32xf32, #tpu.memory_space<vmem>>, vector<1x32xf32>
      %32 = vector.broadcast %31 : vector<1x32xf32> to vector<128x32xf32>
      %33 = arith.addf %30, %32 : vector<128x32xf32>
      %c0_23 = arith.constant 0 : index
      %c0_24 = arith.constant 0 : index
      %34 = vector.load %arg7[%c0_23, %c0_24] : memref<128x32xf32, #tpu.memory_space<vmem>>, vector<128x32xf32>
      tpu.vector_store %arg7[%c0_23, %c0_24], %33 {strides = array<i32>} : memref<128x32xf32, #tpu.memory_space<vmem>>, vector<128x32xf32>,
    } else {
    }
    return
  }
  func.func @transform_0(%arg0: i32, %arg1: i32) -> (i32, i32) {
    %c0_i32 = arith.constant 0 : i32
    %c0_i32_0 = arith.constant 0 : i32
    return %arg0, %c0_i32 : i32, i32
  }
  func.func @transform_1(%arg0: i32, %arg1: i32) -> (i32, i32) {
    %c0_i32 = arith.constant 0 : i32
    %c0_i32_0 = arith.constant 0 : i32
    return %c0_i32, %arg1 : i32, i32
  }
  func.func @transform_2(%arg0: i32, %arg1: i32) -> (i32, i32) {
    %c0_i32 = arith.constant 0 : i32
    %c0_i32_0 = arith.constant 0 : i32
    return %c0_i32, %arg1 : i32, i32
  }
  func.func @transform_3(%arg0: i32, %arg1: i32) -> (i32, i32) {
    %c0_i32 = arith.constant 0 : i32
    %c0_i32_0 = arith.constant 0 : i32
    return %arg1, %c0_i32 : i32, i32
  }
  func.func @transform_4(%arg0: i32, %arg1: i32) -> (i32, i32) {
    %c0_i32 = arith.constant 0 : i32
    %c0_i32_0 = arith.constant 0 : i32
    %c0_i32_1 = arith.constant 0 : i32
    return %c0_i32, %c0_i32_0 : i32, i32
  }
  func.func @transform_5(%arg0: i32, %arg1: i32) -> (i32, i32) {
    %c0_i32 = arith.constant 0 : i32
    %c0_i32_0 = arith.constant 0 : i32
    return %arg0, %c0_i32 : i32, i32
  }
}

</mosaic_0001>

<bundles_post_ra>
// kernel: tpu_custom_call.1
= control target key start
LH: loop header
LB: loop body
LE: loop exit
PB: predicated region body
PF: predicated region fallthrough
CT: control target
= control target key end

     0   :  { %vm24_vm0 = vcmask 261120   ;;  %v924_v46 = vmov 0.0   ;;  %s1507_s1 = inlined_call_operand.vmem [shape: f32[32,128], index: 1, kind: input, shape index: {}]   ;;  %s1508_s0 = inlined_call_operand.vmem [shape: f32[128,32], index: 0, kind: input, shape index: {}]   ;;  %s1509_s3 = inlined_call_operand.vmem [shape: f32[128,32], index: 3, kind: input, shape index: {}]   ;;  %s1510_s5 = inlined_call_operand.vmem [shape: f32[128,32], index: 5, kind: output, shape index: {}]   ;;  %s1511_s2 = inlined_call_operand.vmem [shape: f32[1,128], index: 2, kind: input, shape index: {}]   ;;  %s1512_s4 = inlined_call_operand.vmem [shape: f32[1,32], index: 4, kind: input, shape index: {}]  }
   0x1   :  { %v57_v0 = vld [vmem:[%s1507_s1] sm:$0xff]  ;;  %v58_v1 = vld [vmem:[%s1507_s1 + $0x8] sm:$0xff]  ;;  %v59_v2 = vld [vmem:[%s1507_s1 + $0x10] sm:$0xff]  ;;  %26 = vst.msk [vmem:[%s1510_s5 + $0x8] sm:$0xff] %vm24_vm0, %v924_v46 }
   0x2   :  { %v835_v3 = vpack.c.bf16 %v58_v1, %v57_v0  ;;  %v60_v4 = vld [vmem:[%s1507_s1 + $0x18] sm:$0xff]  ;;  %v41_v5 = vld [vmem:[%s1508_s0] sm:$0xff]  ;;  %v423_v8 = vld [vmem:[%s1509_s3 + $0x8] sm:$0xff]  ;;  %25 = vst.msk [vmem:[%s1510_s5] sm:$0xff] %vm24_vm0, %v924_v46 }
   0x3   :  { %v839_v6 = vpack.c.bf16 %v60_v4, %v59_v2  ;;  %755 = vmatprep.mubr.msk.f32.mxu0 %vm24_vm0, %v41_v5  ;;  %v422_v7 = vld [vmem:[%s1509_s3] sm:$0xff]  ;;  %v42_v9 = vld [vmem:[%s1508_s0 + $0x8] sm:$0xff]  ;;  %v43_v11 = vld [vmem:[%s1508_s0 + $0x10] sm:$0xff]  ;;  %27 = vst.msk [vmem:[%s1510_s5 + $0x10] sm:$0xff] %vm24_vm0, %v924_v46 }
   0x4   :  { %836 = vmatprep.subr.bf16.mxu0 %v835_v3  ;;  %v843_v10 = vpack.c.bf16 %v423_v8, %v422_v7  ;;  %v44_v12 = vld [vmem:[%s1508_s0 + $0x18] sm:$0xff]  ;;  %v45_v13 = vld [vmem:[%s1508_s0 + $0x20] sm:$0xff]  ;;  %v46_v14 = vld [vmem:[%s1508_s0 + $0x28] sm:$0xff]  ;;  %28 = vst.msk [vmem:[%s1510_s5 + $0x18] sm:$0xff] %vm24_vm0, %v924_v46 }
   0x5   :  { %838 = vmatpush3.bf16.msra.mxu0 %v835_v3  ;;  %v47_v15 = vld [vmem:[%s1508_s0 + $0x30] sm:$0xff]  ;;  %v48_v16 = vld [vmem:[%s1508_s0 + $0x38] sm:$0xff]  ;;  %v49_v17 = vld [vmem:[%s1508_s0 + $0x40] sm:$0xff]  ;;  %29 = vst.msk [vmem:[%s1510_s5 + $0x20] sm:$0xff] %vm24_vm0, %v924_v46 }
   0x6   :  { %840 = vmatprep.subr.bf16.mxu0 %v839_v6  ;;  %875 = vmatprep.subr.bf16.mxu1 %v843_v10  ;;  %v50_v18 = vld [vmem:[%s1508_s0 + $0x48] sm:$0xff]  ;;  %v51_v19 = vld [vmem:[%s1508_s0 + $0x50] sm:$0xff]  ;;  %v52_v20 = vld [vmem:[%s1508_s0 + $0x58] sm:$0xff]  ;;  %30 = vst.msk [vmem:[%s1510_s5 + $0x28] sm:$0xff] %vm24_vm0, %v924_v46 }
   0x7   :  { %883 = vmatpush3.bf16.msra.mxu1 %v843_v10  ;;  %v53_v21 = vld [vmem:[%s1508_s0 + $0x60] sm:$0xff]  ;;  %v54_v22 = vld [vmem:[%s1508_s0 + $0x68] sm:$0xff]  ;;  %v55_v23 = vld [vmem:[%s1508_s0 + $0x70] sm:$0xff]  ;;  %31 = vst.msk [vmem:[%s1510_s5 + $0x30] sm:$0xff] %vm24_vm0, %v924_v46 }
   0x8   :  { %v56_v24 = vld [vmem:[%s1508_s0 + $0x78] sm:$0xff]  ;;  %v424_v25 = vld [vmem:[%s1509_s3 + $0x10] sm:$0xff]  ;;  %v426_v28 = vld [vmem:[%s1509_s3 + $0x20] sm:$0xff]  ;;  %32 = vst.msk [vmem:[%s1510_s5 + $0x38] sm:$0xff] %vm24_vm0, %v924_v46 }
   0x9   :  { %842 = vmatpush3.bf16.msra.mxu0 %v839_v6  ;;  %v425_v26 = vld [vmem:[%s1509_s3 + $0x18] sm:$0xff]  ;;  %v427_v29 = vld [vmem:[%s1509_s3 + $0x28] sm:$0xff]  ;;  %v428_v31 = vld [vmem:[%s1509_s3 + $0x30] sm:$0xff]  ;;  %33 = vst.msk [vmem:[%s1510_s5 + $0x40] sm:$0xff] %vm24_vm0, %v924_v46 }
   0xa   :  { %844 = vmatprep.subr.bf16.mxu0 %v843_v10  ;;  %v847_v27 = vpack.c.bf16 %v425_v26, %v424_v25  ;;  %v851_v30 = vpack.c.bf16 %v427_v29, %v426_v28  ;;  %v429_v32 = vld [vmem:[%s1509_s3 + $0x38] sm:$0xff]  ;;  %v430_v34 = vld [vmem:[%s1509_s3 + $0x40] sm:$0xff]  ;;  %v431_v35 = vld [vmem:[%s1509_s3 + $0x48] sm:$0xff]  ;;  %34 = vst.msk [vmem:[%s1510_s5 + $0x48] sm:$0xff] %vm24_vm0, %v924_v46 }
   0xb   :  { %v855_v33 = vpack.c.bf16 %v429_v32, %v428_v31  ;;  %v859_v36 = vpack.c.bf16 %v431_v35, %v430_v34  ;;  %v432_v37 = vld [vmem:[%s1509_s3 + $0x50] sm:$0xff]  ;;  %v433_v38 = vld [vmem:[%s1509_s3 + $0x58] sm:$0xff]  ;;  %v434_v40 = vld [vmem:[%s1509_s3 + $0x60] sm:$0xff]  ;;  %35 = vst.msk [vmem:[%s1510_s5 + $0x50] sm:$0xff] %vm24_vm0, %v924_v46 }
   0xc   :  { %756 = vmatmul.mubr.msk.f32.vlgmr.msra.gmra.mrb[0].mxu0 %vm24_vm0, %v42_v9  ;;  %876 = vmatprep.subr.bf16.mxu1 %v847_v27  ;;  %v863_v39 = vpack.c.bf16 %v433_v38, %v432_v37  ;;  %v435_v41 = vld [vmem:[%s1509_s3 + $0x68] sm:$0xff]  ;;  %v436_v43 = vld [vmem:[%s1509_s3 + $0x70] sm:$0xff]  ;;  %v437_v44 = vld [vmem:[%s1509_s3 + $0x78] sm:$0xff]  ;;  %36 = vst.msk [vmem:[%s1510_s5 + $0x58] sm:$0xff] %vm24_vm0, %v924_v46 }
   0xd   :  { %758 = vmatprep.mubr.msk.f32.mxu0 %vm24_vm0, %v43_v11  ;;  %846 = vmatpush3.bf16.msra.mxu0 %v843_v10  ;;  %v867_v42 = vpack.c.bf16 %v435_v41, %v434_v40  ;;  %v871_v45 = vpack.c.bf16 %v437_v44, %v436_v43  ;;  %37 = vst.msk [vmem:[%s1510_s5 + $0x60] sm:$0xff] %vm24_vm0, %v924_v46  ;;  %38 = vst.msk [vmem:[%s1510_s5 + $0x68] sm:$0xff] %vm24_vm0, %v924_v46  ;;  %v1146_v47 = vld [vmem:[%s1511_s2] ss:$0 sm:$0xff] }
   0xe   :  { %848 = vmatprep.subr.bf16.mxu0 %v847_v27  ;;  %884 = vmatpush3.bf16.msra.mxu1 %v847_v27  ;;  %39 = vst.msk [vmem:[%s1510_s5 + $0x70] sm:$0xff] %vm24_vm0, %v924_v46  ;;  %40 = vst.msk [vmem:[%s1510_s5 + $0x78] sm:$0xff] %vm24_vm0, %v924_v46 }
   0xf   :  { %877 = vmatprep.subr.bf16.mxu1 %v851_v30 }
  0x10   :  { %759 = vmatmul.mubr.msk.f32.gmra.mrb[2].mxu0 %vm24_vm0, %v44_v12 }
  0x11   :  { %761 = vmatprep.mubr.msk.f32.mxu0 %vm24_vm0, %v45_v13  ;;  %850 = vmatpush3.bf16.msra.mxu0 %v847_v27 }
  0x12   :  { %852 = vmatprep.subr.bf16.mxu0 %v851_v30  ;;  %885 = vmatpush3.bf16.msra.mxu1 %v851_v30 }
  0x13   :  { %878 = vmatprep.subr.bf16.mxu1 %v855_v33 }
  0x14   :  { %762 = vmatmul.mubr.msk.f32.gmra.mrb[4].mxu0 %vm24_vm0, %v46_v14 }
  0x15   :  { %764 = vmatprep.mubr.msk.f32.mxu0 %vm24_vm0, %v47_v15  ;;  %854 = vmatpush3.bf16.msra.mxu0 %v851_v30 }
  0x16   :  { %856 = vmatprep.subr.bf16.mxu0 %v855_v33  ;;  %886 = vmatpush3.bf16.msra.mxu1 %v855_v33 }
  0x17   :  { %879 = vmatprep.subr.bf16.mxu1 %v859_v36 }
  0x18   :  { %765 = vmatmul.mubr.msk.f32.gmra.mrb[6].mxu0 %vm24_vm0, %v48_v16 }
  0x19   :  { %767 = vmatprep.mubr.msk.f32.mxu0 %vm24_vm0, %v49_v17  ;;  %858 = vmatpush3.bf16.msra.mxu0 %v855_v33 }
  0x1a   :  { %860 = vmatprep.subr.bf16.mxu0 %v859_v36  ;;  %887 = vmatpush3.bf16.msra.mxu1 %v859_v36 }
  0x1b   :  { %880 = vmatprep.subr.bf16.mxu1 %v863_v39 }
  0x1c   :  { %768 = vmatmul.mubr.msk.f32.gmra.mrb[8].mxu0 %vm24_vm0, %v50_v18 }
  0x1d   :  { %770 = vmatprep.mubr.msk.f32.mxu0 %vm24_vm0, %v51_v19  ;;  %862 = vmatpush3.bf16.msra.mxu0 %v859_v36 }
  0x1e   :  { %864 = vmatprep.subr.bf16.mxu0 %v863_v39  ;;  %888 = vmatpush3.bf16.msra.mxu1 %v863_v39 }
  0x1f   :  { %881 = vmatprep.subr.bf16.mxu1 %v867_v42 }
  0x20   :  { %771 = vmatmul.mubr.msk.f32.gmra.mrb[10].mxu0 %vm24_vm0, %v52_v20 }
  0x21   :  { %773 = vmatprep.mubr.msk.f32.mxu0 %vm24_vm0, %v53_v21  ;;  %866 = vmatpush3.bf16.msra.mxu0 %v863_v39 }
  0x22   :  { %868 = vmatprep.subr.bf16.mxu0 %v867_v42  ;;  %889 = vmatpush3.bf16.msra.mxu1 %v867_v42 }
  0x23   :  { %882 = vmatprep.subr.bf16.mxu1 %v871_v45 }
  0x24   :  { %774 = vmatmul.mubr.msk.f32.gmra.mrb[12].mxu0 %vm24_vm0, %v54_v22 }
  0x25   :  { %776 = vmatprep.mubr.msk.f32.mxu0 %vm24_vm0, %v55_v23  ;;  %870 = vmatpush3.bf16.msra.mxu0 %v867_v42 }
  0x26   :  { %872 = vmatprep.subr.bf16.mxu0 %v871_v45  ;;  %890 = vmatpush3.bf16.msra.mxu1 %v871_v45 }
  0x28   :  { %777 = vmatmul.mubr.msk.f32.gmra.mrb[14].mxu0 %vm24_vm0, %v56_v24 }
  0x29   :  { %874 = vmatpush3.bf16.msra.mxu0 %v871_v45 }
  0xdf   :  { %v757_v48 = vpop.f32.mrb[0].mxu0 }
  0xe0   :  { %v189_v49 = vadd.f32 %v757_v48, %v1146_v47  ;;  %v183_v50 = vpop.f32.mrb[1].mxu0 }
  0xe1   :  { %v184_v51 = vadd.f32 %v1146_v47, %v183_v50 }
  0xe2   :  { %v279_v52 = vmul.f32 0.044715, %v189_v49  ;;  %v263_v36 = vmul.f32 0.5, %v189_v49 }
  0xe3   :  { %v278_v53 = vmul.f32 0.044715, %v184_v51  ;;  %v760_v54 = vpop.f32.mrb[2].mxu0  ;;  %v262_v42 = vmul.f32 0.5, %v184_v51 }
  0xe4   :  { %v295_v55 = vmul.f32 %v279_v52, %v189_v49  ;;  %v1151_v56 = vadd.f32 %v760_v54, %v1146_v47  ;;  %v193_v57 = vpop.f32.mrb[3].mxu0 }
  0xe5   :  { %v294_v58 = vmul.f32 %v278_v53, %v184_v51  ;;  %v1154_v59 = vadd.f32 %v1146_v47, %v193_v57 }
  0xe6   :  { %v311_v60 = vmul.f32 %v295_v55, %v189_v49  ;;  %v281_v61 = vmul.f32 0.044715, %v1151_v56  ;;  %v265_v55 = vmul.f32 0.5, %v1151_v56 }
  0xe7   :  { %v280_v62 = vmul.f32 0.044715, %v1154_v59  ;;  %v763_v63 = vpop.f32.mrb[4].mxu0  ;;  %v310_v0 = vmul.f32 %v294_v58, %v184_v51 }
  0xe8   :  { %v327_v1 = vadd.f32 %v311_v60, %v189_v49  ;;  %v297_v2 = vmul.f32 %v281_v61, %v1151_v56  ;;  %v1160_v3 = vadd.f32 %v763_v63, %v1146_v47  ;;  %v203_v4 = vpop.f32.mrb[5].mxu0 }
  0xe9   :  { %v296_v5 = vmul.f32 %v280_v62, %v1154_v59  ;;  %v1164_v6 = vadd.f32 %v1146_v47, %v203_v4  ;;  %v326_v7 = vadd.f32 %v310_v0, %v184_v51 }
  0xea   :  { %v343_v8 = vmul.f32 0.7978846, %v327_v1  ;;  %v283_v9 = vmul.f32 0.044715, %v1160_v3  ;;  %v313_v10 = vmul.f32 %v297_v2, %v1151_v56 }
  0xeb   :  { %v282_v11 = vmul.f32 0.044715, %v1164_v6  ;;  %v766_v12 = vpop.f32.mrb[6].mxu0  ;;  %v342_v13 = vmul.f32 0.7978846, %v326_v7  ;;  %v312_v14 = vmul.f32 %v296_v5, %v1154_v59  ;;  %v264_v7 = vmul.f32 0.5, %v1154_v59 }
  0xec   :  { %892 = vtanh.f32 %v343_v8  ;;  %v299_v15 = vmul.f32 %v283_v9, %v1160_v3  ;;  %v1172_v16 = vadd.f32 %v766_v12, %v1146_v47  ;;  %v213_v17 = vpop.f32.mrb[7].mxu0  ;;  %v329_v18 = vadd.f32 %v313_v10, %v1151_v56 }
  0xed   :  { %v298_v19 = vmul.f32 %v282_v11, %v1164_v6  ;;  %v1177_v20 = vadd.f32 %v1146_v47, %v213_v17  ;;  %894 = vtanh.f32 %v342_v13  ;;  %v328_v21 = vadd.f32 %v312_v14, %v1154_v59 }
  0xee   :  { %v285_v22 = vmul.f32 0.044715, %v1172_v16  ;;  %v345_v23 = vmul.f32 0.7978846, %v329_v18  ;;  %v315_v24 = vmul.f32 %v299_v15, %v1160_v3 }
  0xef   :  { %v769_v25 = vpop.f32.mrb[8].mxu0  ;;  %v344_v26 = vmul.f32 0.7978846, %v328_v21  ;;  %v314_v27 = vmul.f32 %v298_v19, %v1164_v6  ;;  %v284_v28 = vmul.f32 0.044715, %v1177_v20 }
  0xf0   :  { %v301_v29 = vmul.f32 %v285_v22, %v1172_v16  ;;  %v1186_v30 = vadd.f32 %v769_v25, %v1146_v47  ;;  %v223_v31 = vpop.f32.mrb[9].mxu0  ;;  %896 = vtanh.f32 %v345_v23  ;;  %v331_v32 = vadd.f32 %v315_v24, %v1160_v3 }
  0xf1   :  { %v1190_v33 = vadd.f32 %v1146_v47, %v223_v31  ;;  %898 = vtanh.f32 %v344_v26  ;;  %v330_v34 = vadd.f32 %v314_v27, %v1164_v6  ;;  %v300_v35 = vmul.f32 %v284_v28, %v1177_v20 }
  0xf2   :  { %v287_v37 = vmul.f32 0.044715, %v1186_v30  ;;  %v347_v38 = vmul.f32 0.7978846, %v331_v32  ;;  %v317_v39 = vmul.f32 %v301_v29, %v1172_v16 }
  0xf3   :  { %v286_v40 = vmul.f32 0.044715, %v1190_v33  ;;  %v772_v41 = vpop.f32.mrb[10].mxu0  ;;  %v346_v43 = vmul.f32 0.7978846, %v330_v34  ;;  %v316_v44 = vmul.f32 %v300_v35, %v1177_v20 }
  0xf4   :  { %v303_v45 = vmul.f32 %v287_v37, %v1186_v30  ;;  %v1200_v46 = vadd.f32 %v772_v41, %v1146_v47  ;;  %v233_v48 = vpop.f32.mrb[11].mxu0  ;;  %900 = vtanh.f32 %v347_v38  ;;  %v333_v49 = vadd.f32 %v317_v39, %v1172_v16 }
  0xf5   :  { %v302_v50 = vmul.f32 %v286_v40, %v1190_v33  ;;  %v1205_v52 = vadd.f32 %v1146_v47, %v233_v48  ;;  %902 = vtanh.f32 %v346_v43  ;;  %v332_v51 = vadd.f32 %v316_v44, %v1177_v20 }
  0xf6   :  { %v893_v53 = vpop.eup %892  ;;  %v289_v54 = vmul.f32 0.044715, %v1200_v46  ;;  %v349_v57 = vmul.f32 0.7978846, %v333_v49  ;;  %v319_v58 = vmul.f32 %v303_v45, %v1186_v30 }
  0xf7   :  { %v895_v60 = vpop.eup %894  ;;  %v288_v61 = vmul.f32 0.044715, %v1205_v52  ;;  %v775_v62 = vpop.f32.mrb[12].mxu0  ;;  %v375_v63 = vadd.f32 1.0, %v893_v53  ;;  %v348_v0 = vmul.f32 0.7978846, %v332_v51  ;;  %v318_v1 = vmul.f32 %v302_v50, %v1190_v33 }
  0xf8   :  { %v1214_v2 = vadd.f32 %v775_v62, %v1146_v47  ;;  %v243_v4 = vpop.f32.mrb[13].mxu0  ;;  %v374_v5 = vadd.f32 1.0, %v895_v60  ;;  %904 = vtanh.f32 %v349_v57  ;;  %v305_v56 = vmul.f32 %v289_v54, %v1200_v46 }
  0xf9   :  { %v304_v8 = vmul.f32 %v288_v61, %v1205_v52  ;;  %v1220_v9 = vadd.f32 %v1146_v47, %v243_v4  ;;  %906 = vtanh.f32 %v348_v0  ;;  %v334_v13 = vadd.f32 %v318_v1, %v1190_v33 }
  0xfa   :  { %v897_v10 = vpop.eup %896  ;;  %v291_v11 = vmul.f32 0.044715, %v1214_v2  ;;  %v390_v12 = vmul.f32 %v374_v5, %v262_v42  ;;  %v335_v14 = vadd.f32 %v319_v58, %v1186_v30  ;;  %v391_v18 = vmul.f32 %v375_v63, %v263_v36 }
  0xfb   :  { %v899_v15 = vpop.eup %898  ;;  %v290_v59 = vmul.f32 0.044715, %v1220_v9  ;;  %v778_v17 = vpop.f32.mrb[14].mxu0  ;;  %v377_v19 = vadd.f32 1.0, %v897_v10  ;;  %v320_v21 = vmul.f32 %v304_v8, %v1205_v52  ;;  %v350_v26 = vmul.f32 0.7978846, %v334_v13 }
  0xfc   :  { %v307_v22 = vmul.f32 %v291_v11, %v1214_v2  ;;  %v1229_v23 = vadd.f32 %v778_v17, %v1146_v47  ;;  %v253_v24 = vpop.f32.mrb[15].mxu0  ;;  %811 = vmatprep.mubr.f32.mxu0 %v390_v12  ;;  %v376_v25 = vadd.f32 1.0, %v899_v15  ;;  %v351_v31 = vmul.f32 0.7978846, %v335_v14 }
  0xfd   :  { %v306_v27 = vmul.f32 %v290_v59, %v1220_v9  ;;  %v1233_v28 = vadd.f32 %v1146_v47, %v253_v24  ;;  %812 = vmatmul.mubr.f32.vlgmr.msra.gmra.mrb[16].mxu0 %v391_v18  ;;  %v393_v29 = vmul.f32 %v377_v19, %v265_v55  ;;  %908 = vtanh.f32 %v350_v26 }
  0xfe   :  { %v901_v32 = vpop.eup %900  ;;  %v293_v34 = vmul.f32 0.044715, %v1229_v23  ;;  %v392_v35 = vmul.f32 %v376_v25, %v264_v7  ;;  %v336_v36 = vadd.f32 %v320_v21, %v1205_v52  ;;  %910 = vtanh.f32 %v351_v31 }
  0xff   :  { %v903_v37 = vpop.eup %902  ;;  %v292_v38 = vmul.f32 0.044715, %v1233_v28  ;;  %v379_v39 = vadd.f32 1.0, %v901_v32  ;;  %v321_v40 = vmul.f32 %v305_v56, %v1200_v46  ;;  %v266_v47 = vmul.f32 0.5, %v1164_v6 }
 0x100   :  { %814 = vmatprep.mubr.f32.mxu0 %v392_v35  ;;  %v378_v41 = vadd.f32 1.0, %v903_v37  ;;  %v267_v42 = vmul.f32 0.5, %v1160_v3  ;;  %v352_v43 = vmul.f32 0.7978846, %v336_v36  ;;  %v309_v44 = vmul.f32 %v293_v34, %v1229_v23 }
 0x101   :  { %v308_v45 = vmul.f32 %v292_v38, %v1233_v28  ;;  %815 = vmatmul.mubr.f32.gmra.mrb[18].mxu0 %v393_v29  ;;  %v337_v48 = vadd.f32 %v321_v40, %v1200_v46  ;;  %v322_v49 = vmul.f32 %v306_v27, %v1220_v9  ;;  %v323_v53 = vmul.f32 %v307_v22, %v1214_v2 }
 0x102   :  { %v905_v50 = vpop.eup %904  ;;  %v394_v51 = vmul.f32 %v378_v41, %v266_v47  ;;  %912 = vtanh.f32 %v352_v43  ;;  %v395_v6 = vmul.f32 %v379_v39, %v267_v42  ;;  %v268_v58 = vmul.f32 0.5, %v1177_v20  ;;  %v407_v41 = vld [vmem:[%s1510_s5 + $0x8] sm:$0xff] }
 0x103   :  { %v907_v54 = vpop.eup %906  ;;  %v381_v55 = vadd.f32 1.0, %v905_v50  ;;  %v353_v57 = vmul.f32 0.7978846, %v337_v48  ;;  %v338_v3 = vadd.f32 %v322_v49, %v1220_v9  ;;  %v339_v61 = vadd.f32 %v323_v53, %v1214_v2  ;;  %v411_v53 = vld [vmem:[%s1510_s5 + $0x28] sm:$0xff] }
 0x104   :  { %817 = vmatprep.mubr.f32.mxu0 %v394_v51  ;;  %v380_v60 = vadd.f32 1.0, %v907_v54  ;;  %v324_v62 = vmul.f32 %v308_v45, %v1233_v28  ;;  %v269_v63 = vmul.f32 0.5, %v1172_v16  ;;  %v325_v1 = vmul.f32 %v309_v44, %v1229_v23  ;;  %v409_v45 = vld [vmem:[%s1510_s5 + $0x18] sm:$0xff]  ;;  %v410_v54 = vld [vmem:[%s1510_s5 + $0x20] sm:$0xff] }
 0x105   :  { %818 = vmatmul.mubr.f32.gmra.mrb[20].mxu0 %v395_v6  ;;  %914 = vtanh.f32 %v353_v57  ;;  %v354_v0 = vmul.f32 0.7978846, %v338_v3  ;;  %v355_v5 = vmul.f32 0.7978846, %v339_v61  ;;  %v270_v16 = vmul.f32 0.5, %v1190_v33  ;;  %v413_v61 = vld [vmem:[%s1510_s5 + $0x38] sm:$0xff] }
 0x106   :  { %v396_v4 = vmul.f32 %v380_v60, %v268_v58  ;;  %v340_v7 = vadd.f32 %v324_v62, %v1233_v28  ;;  %v397_v56 = vmul.f32 %v381_v55, %v269_v63  ;;  %v341_v20 = vadd.f32 %v325_v1, %v1229_v23  ;;  %v1295_v6 = vld [vmem:[%s1512_s4] ss:$0 sm:$0xff] }
 0x107   :  { %916 = vtanh.f32 %v354_v0  ;;  %v909_v8 = vpop.eup %908  ;;  %v271_v14 = vmul.f32 0.5, %v1186_v30  ;;  %v272_v19 = vmul.f32 0.5, %v1205_v52  ;;  %v273_v25 = vmul.f32 0.5, %v1200_v46  ;;  %v412_v0 = vld [vmem:[%s1510_s5 + $0x30] sm:$0xff] }
 0x108   :  { %820 = vmatprep.mubr.f32.mxu1 %v396_v4  ;;  %918 = vtanh.f32 %v355_v5  ;;  %v356_v10 = vmul.f32 0.7978846, %v340_v7  ;;  %v911_v11 = vpop.eup %910  ;;  %v382_v12 = vadd.f32 1.0, %v909_v8  ;;  %v357_v13 = vmul.f32 0.7978846, %v341_v20 }
 0x109   :  { %821 = vmatmul.mubr.f32.vlgmr.msra.gmra.mrb[0].mxu1 %v397_v56  ;;  %v383_v15 = vadd.f32 1.0, %v911_v11  ;;  %v274_v29 = vmul.f32 0.5, %v1220_v9  ;;  %v275_v52 = vmul.f32 0.5, %v1214_v2  ;;  %v276_v37 = vmul.f32 0.5, %v1233_v28  ;;  %v406_v2 = vld [vmem:[%s1510_s5] sm:$0xff]  ;;  %v415_v11 = vld [vmem:[%s1510_s5 + $0x48] sm:$0xff] }
 0x10a   :  { %920 = vtanh.f32 %v356_v10  ;;  %v398_v59 = vmul.f32 %v382_v12, %v270_v16  ;;  %v277_v47 = vmul.f32 0.5, %v1229_v23  ;;  %v408_v23 = vld [vmem:[%s1510_s5 + $0x10] sm:$0xff]  ;;  %v414_v12 = vld [vmem:[%s1510_s5 + $0x40] sm:$0xff] }
 0x10b   :  { %922 = vtanh.f32 %v357_v13  ;;  %v399_v18 = vmul.f32 %v383_v15, %v271_v14 }
 0x10c   :  { %v913_v17 = vpop.eup %912  ;;  %823 = vmatprep.mubr.f32.mxu1 %v398_v59 }
 0x10d   :  { %v384_v21 = vadd.f32 1.0, %v913_v17  ;;  %824 = vmatmul.mubr.f32.gmra.mrb[2].mxu1 %v399_v18 }
 0x10f   :  { %v915_v22 = vpop.eup %914  ;;  %v400_v24 = vmul.f32 %v384_v21, %v272_v19 }
 0x110   :  { %v385_v33 = vadd.f32 1.0, %v915_v22  ;;  %v417_v22 = vld [vmem:[%s1510_s5 + $0x58] sm:$0xff] }
 0x111   :  { %v917_v26 = vpop.eup %916  ;;  %826 = vmatprep.mubr.f32.mxu1 %v400_v24 }
 0x112   :  { %v919_v27 = vpop.eup %918  ;;  %v401_v30 = vmul.f32 %v385_v33, %v273_v25  ;;  %v386_v31 = vadd.f32 1.0, %v917_v26  ;;  %v416_v25 = vld [vmem:[%s1510_s5 + $0x50] sm:$0xff] }
 0x113   :  { %v387_v32 = vadd.f32 1.0, %v919_v27 }
 0x114   :  { %v921_v34 = vpop.eup %920  ;;  %827 = vmatmul.mubr.f32.gmra.mrb[4].mxu1 %v401_v30  ;;  %v402_v35 = vmul.f32 %v386_v31, %v274_v29 }
 0x115   :  { %v923_v36 = vpop.eup %922  ;;  %v388_v38 = vadd.f32 1.0, %v921_v34  ;;  %v403_v46 = vmul.f32 %v387_v32, %v275_v52  ;;  %v419_v34 = vld [vmem:[%s1510_s5 + $0x68] sm:$0xff] }
 0x116   :  { %829 = vmatprep.mubr.f32.mxu1 %v402_v35  ;;  %v389_v39 = vadd.f32 1.0, %v923_v36  ;;  %v418_v35 = vld [vmem:[%s1510_s5 + $0x60] sm:$0xff] }
 0x117   :  { %v404_v40 = vmul.f32 %v388_v38, %v276_v37 }
 0x118   :  { %830 = vmatmul.mubr.f32.gmra.mrb[6].mxu1 %v403_v46  ;;  %v405_v9 = vmul.f32 %v389_v39, %v277_v47 }
 0x119   :  { %832 = vmatprep.mubr.f32.mxu1 %v404_v40 }
 0x11c   :  { %833 = vmatmul.mubr.f32.gmra.mrb[8].mxu1 %v405_v9  ;;  %v421_v9 = vld [vmem:[%s1510_s5 + $0x78] sm:$0xff] }
 0x1d0   :  { %v813_v28 = vpop.f32.mrb[16].mxu0 }
 0x1d1   :  { %v584_v42 = vadd.f32 %v813_v28, %v407_v41  ;;  %v504_v43 = vpop.f32.mrb[17].mxu0  ;;  %v420_v41 = vld [vmem:[%s1510_s5 + $0x70] sm:$0xff] }
 0x1d2   :  { %v583_v44 = vadd.f32 %v504_v43, %v406_v2 }
 0x1d3   :  { %600 = vst.msk [vmem:[%s1510_s5 + $0x8] sm:$0xff] %vm24_vm0, %v584_v42 }
 0x1d4   :  { %599 = vst.msk [vmem:[%s1510_s5] sm:$0xff] %vm24_vm0, %v583_v44  ;;  %v816_v48 = vpop.f32.mrb[18].mxu0 }
 0x1d5   :  { %v586_v49 = vadd.f32 %v816_v48, %v409_v45  ;;  %v514_v50 = vpop.f32.mrb[19].mxu0 }
 0x1d6   :  { %v585_v51 = vadd.f32 %v514_v50, %v408_v23 }
 0x1d7   :  { %602 = vst.msk [vmem:[%s1510_s5 + $0x18] sm:$0xff] %vm24_vm0, %v586_v49 }
 0x1d8   :  { %601 = vst.msk [vmem:[%s1510_s5 + $0x10] sm:$0xff] %vm24_vm0, %v585_v51  ;;  %v819_v55 = vpop.f32.mrb[20].mxu0 }
 0x1d9   :  { %v588_v57 = vadd.f32 %v819_v55, %v411_v53  ;;  %v524_v3 = vpop.f32.mrb[21].mxu0 }
 0x1da   :  { %v619_v58 = vld [vmem:[%s1510_s5 + $0x8] sm:$0xff]  ;;  %v587_v60 = vadd.f32 %v524_v3, %v410_v54 }
 0x1db   :  { %v642_v62 = vadd.f32 %v1295_v6, %v619_v58  ;;  %v618_v63 = vld [vmem:[%s1510_s5] sm:$0xff]  ;;  %604 = vst.msk [vmem:[%s1510_s5 + $0x28] sm:$0xff] %vm24_vm0, %v588_v57 }
 0x1dc   :  { %v641_v1 = vadd.f32 %v1295_v6, %v618_v63  ;;  %603 = vst.msk [vmem:[%s1510_s5 + $0x20] sm:$0xff] %vm24_vm0, %v587_v60  ;;  %v822_v4 = vpop.f32.mrb[0].mxu1 }
 0x1dd   :  { %658 = vst.msk [vmem:[%s1510_s5 + $0x8] sm:$0xff] %vm24_vm0, %v642_v62  ;;  %v590_v5 = vadd.f32 %v822_v4, %v413_v61  ;;  %v534_v7 = vpop.f32.mrb[1].mxu1 }
 0x1de   :  { %657 = vst.msk [vmem:[%s1510_s5] sm:$0xff] %vm24_vm0, %v641_v1  ;;  %v621_v56 = vld [vmem:[%s1510_s5 + $0x18] sm:$0xff]  ;;  %v589_v20 = vadd.f32 %v534_v7, %v412_v0 }
 0x1df   :  { %v644_v8 = vadd.f32 %v1295_v6, %v621_v56  ;;  %v620_v10 = vld [vmem:[%s1510_s5 + $0x10] sm:$0xff]  ;;  %606 = vst.msk [vmem:[%s1510_s5 + $0x38] sm:$0xff] %vm24_vm0, %v590_v5 }
 0x1e0   :  { %v643_v16 = vadd.f32 %v1295_v6, %v620_v10  ;;  %605 = vst.msk [vmem:[%s1510_s5 + $0x30] sm:$0xff] %vm24_vm0, %v589_v20  ;;  %v825_v13 = vpop.f32.mrb[2].mxu1 }
 0x1e1   :  { %660 = vst.msk [vmem:[%s1510_s5 + $0x18] sm:$0xff] %vm24_vm0, %v644_v8  ;;  %v592_v15 = vadd.f32 %v825_v13, %v415_v11  ;;  %v544_v59 = vpop.f32.mrb[3].mxu1 }
 0x1e2   :  { %659 = vst.msk [vmem:[%s1510_s5 + $0x10] sm:$0xff] %vm24_vm0, %v643_v16  ;;  %v623_v14 = vld [vmem:[%s1510_s5 + $0x28] sm:$0xff]  ;;  %v591_v19 = vadd.f32 %v544_v59, %v414_v12 }
 0x1e3   :  { %v646_v17 = vadd.f32 %v1295_v6, %v623_v14  ;;  %v622_v18 = vld [vmem:[%s1510_s5 + $0x20] sm:$0xff]  ;;  %608 = vst.msk [vmem:[%s1510_s5 + $0x48] sm:$0xff] %vm24_vm0, %v592_v15 }
 0x1e4   :  { %v645_v21 = vadd.f32 %v1295_v6, %v622_v18  ;;  %607 = vst.msk [vmem:[%s1510_s5 + $0x40] sm:$0xff] %vm24_vm0, %v591_v19 }
 0x1e5   :  { %662 = vst.msk [vmem:[%s1510_s5 + $0x28] sm:$0xff] %vm24_vm0, %v646_v17 }
 0x1e6   :  { %661 = vst.msk [vmem:[%s1510_s5 + $0x20] sm:$0xff] %vm24_vm0, %v645_v21  ;;  %v625_v24 = vld [vmem:[%s1510_s5 + $0x38] sm:$0xff] }
 0x1e7   :  { %v648_v33 = vadd.f32 %v1295_v6, %v625_v24  ;;  %v624_v26 = vld [vmem:[%s1510_s5 + $0x30] sm:$0xff]  ;;  %v828_v27 = vpop.f32.mrb[4].mxu1 }
 0x1e8   :  { %v647_v30 = vadd.f32 %v1295_v6, %v624_v26  ;;  %v594_v29 = vadd.f32 %v828_v27, %v417_v22  ;;  %v554_v31 = vpop.f32.mrb[5].mxu1 }
 0x1e9   :  { %664 = vst.msk [vmem:[%s1510_s5 + $0x38] sm:$0xff] %vm24_vm0, %v648_v33  ;;  %v593_v32 = vadd.f32 %v554_v31, %v416_v25 }
 0x1ea   :  { %663 = vst.msk [vmem:[%s1510_s5 + $0x30] sm:$0xff] %vm24_vm0, %v647_v30  ;;  %610 = vst.msk [vmem:[%s1510_s5 + $0x58] sm:$0xff] %vm24_vm0, %v594_v29  ;;  %v627_v52 = vld [vmem:[%s1510_s5 + $0x48] sm:$0xff] }
 0x1eb   :  { %609 = vst.msk [vmem:[%s1510_s5 + $0x50] sm:$0xff] %vm24_vm0, %v593_v32  ;;  %v831_v36 = vpop.f32.mrb[6].mxu1  ;;  %v650_v37 = vadd.f32 %v1295_v6, %v627_v52  ;;  %v626_v38 = vld [vmem:[%s1510_s5 + $0x40] sm:$0xff] }
 0x1ec   :  { %v596_v46 = vadd.f32 %v831_v36, %v419_v34  ;;  %v564_v39 = vpop.f32.mrb[7].mxu1  ;;  %v649_v40 = vadd.f32 %v1295_v6, %v626_v38 }
 0x1ed   :  { %v595_v47 = vadd.f32 %v564_v39, %v418_v35  ;;  %666 = vst.msk [vmem:[%s1510_s5 + $0x48] sm:$0xff] %vm24_vm0, %v650_v37 }
 0x1ee   :  { %612 = vst.msk [vmem:[%s1510_s5 + $0x68] sm:$0xff] %vm24_vm0, %v596_v46  ;;  %665 = vst.msk [vmem:[%s1510_s5 + $0x40] sm:$0xff] %vm24_vm0, %v649_v40 }
 0x1ef   :  { %611 = vst.msk [vmem:[%s1510_s5 + $0x60] sm:$0xff] %vm24_vm0, %v595_v47  ;;  %v834_v2 = vpop.f32.mrb[8].mxu1 }
 0x1f0   :  { %v598_v28 = vadd.f32 %v834_v2, %v421_v9  ;;  %v574_v42 = vpop.f32.mrb[9].mxu1 }
 0x1f1   :  { %v629_v43 = vld [vmem:[%s1510_s5 + $0x58] sm:$0xff]  ;;  %v597_v44 = vadd.f32 %v574_v42, %v420_v41 }
 0x1f2   :  { %v652_v45 = vadd.f32 %v1295_v6, %v629_v43  ;;  %v628_v23 = vld [vmem:[%s1510_s5 + $0x50] sm:$0xff]  ;;  %614 = vst.msk [vmem:[%s1510_s5 + $0x78] sm:$0xff] %vm24_vm0, %v598_v28 }
 0x1f3   :  { %v651_v48 = vadd.f32 %v1295_v6, %v628_v23  ;;  %613 = vst.msk [vmem:[%s1510_s5 + $0x70] sm:$0xff] %vm24_vm0, %v597_v44 }
 0x1f4   :  { %668 = vst.msk [vmem:[%s1510_s5 + $0x58] sm:$0xff] %vm24_vm0, %v652_v45 }
 0x1f5   :  { %667 = vst.msk [vmem:[%s1510_s5 + $0x50] sm:$0xff] %vm24_vm0, %v651_v48  ;;  %v631_v49 = vld [vmem:[%s1510_s5 + $0x68] sm:$0xff] }
 0x1f6   :  { %v654_v50 = vadd.f32 %v1295_v6, %v631_v49  ;;  %v630_v51 = vld [vmem:[%s1510_s5 + $0x60] sm:$0xff] }
 0x1f7   :  { %v653_v53 = vadd.f32 %v1295_v6, %v630_v51 }
 0x1f8   :  { %670 = vst.msk [vmem:[%s1510_s5 + $0x68] sm:$0xff] %vm24_vm0, %v654_v50 }
 0x1f9   :  { %669 = vst.msk [vmem:[%s1510_s5 + $0x60] sm:$0xff] %vm24_vm0, %v653_v53  ;;  %v633_v54 = vld [vmem:[%s1510_s5 + $0x78] sm:$0xff] }
 0x1fa   :  { %v656_v55 = vadd.f32 %v1295_v6, %v633_v54  ;;  %v632_v57 = vld [vmem:[%s1510_s5 + $0x70] sm:$0xff] }
 0x1fb   :  { %v655_v3 = vadd.f32 %v1295_v6, %v632_v57 }
 0x1fc   :  { %672 = vst.msk [vmem:[%s1510_s5 + $0x78] sm:$0xff] %vm24_vm0, %v656_v55 }
 0x1fd   :  { %671 = vst.msk [vmem:[%s1510_s5 + $0x70] sm:$0xff] %vm24_vm0, %v655_v3 }

</bundles_post_ra>
